<compile_context>
chip_gen: v6e
topology: v6e:2x2x1
jax: 0.10.0
libtpu: 0.0.40
codegen_flags: <defaults>
</compile_context>

<pallas_src>
import functools

import jax
import jax.numpy as jnp
import numpy as np
from jax.experimental import pallas as pl
from jax.experimental.pallas import tpu as pltpu

_EPS = 1e-5                      # nn.InstanceNorm1d default eps
_SQRT_2_OVER_PI = 0.7978845608028654
_LANE = 128


def _round_up(n, m):
    return ((n + m - 1) // m) * m


def _gelu_tanh(x):
    # GELU with tanh approximation == nn.GELU('tanh'); tanh goes to the EUP slot.
    return 0.5 * x * (1.0 + jnp.tanh(_SQRT_2_OVER_PI * (x + 0.044715 * x * x * x)))


def _adain_mask(x, scale1p, beta, mask):
    """Fused InstanceNorm1d(affine=False, biased var) + (1+gamma)*xn + beta, then * mask.

    x: (T, C) f32, scale1p = (1+gamma): (1, C) f32, beta: (1, C) f32, mask: (T, 1) f32.
    Single reduction pass: var = E[x^2] - mean^2; scale/shift folded into one FMA.
    (Stats are over the full padded T, exactly like the PyTorch module.)
    """
    inv_t = 1.0 / x.shape[0]
    mean = jnp.sum(x, axis=0, keepdims=True) * inv_t
    ex2 = jnp.sum(x * x, axis=0, keepdims=True) * inv_t
    var = ex2 - mean * mean
    inv = jax.lax.rsqrt(var + _EPS)
    scale = scale1p * inv
    shift = beta - mean * scale
    return (x * scale + shift) * mask


def _im2col(h, t_iota, K, pad):
    """(T, C) -> (T, K*C): K time-shifted taps concatenated along lanes.

    Shifts use pltpu.roll (XLU slot, overlaps MXU/VPU) + halo-row masking; no VMEM
    scratch roundtrip. Lane-concat offsets are 128-aligned (C padded to 128), so the
    slab feeds the MXU as one wide-contraction matmul instead of K tiny dots."""
    T = h.shape[0]
    if K == 1:
        return h
    cols = []
    for dk in range(K):
        lo = pad - dk                       # tap[t] = h[t - lo], zero outside [0, T)
        if lo == 0:
            cols.append(h)
            continue
        rolled = pltpu.roll(h, shift=lo % T, axis=0)
        valid = (t_iota >= lo) & (t_iota < T + lo)
        cols.append(jnp.where(valid, rolled, 0.0))
    return jnp.concatenate(cols, axis=-1)


def _cond_ffn_kernel(lens_ref, x_ref, g1_ref, b1_ref, g2_ref, b2_ref,
                     w1_ref, c1b_ref, w2_ref, c2b_ref, o_ref,
                     *, kernel_size, seq_len):
    K, T = kernel_size, seq_len
    pad = (K - 1) // 2

    b = pl.program_id(0)
    length = lens_ref[b]                                          # SMEM scalar

    t_iota = jax.lax.broadcasted_iota(jnp.int32, (T, 1), 0)
    mask = (t_iota < length).astype(jnp.float32)                  # (T, 1)

    x = x_ref[0].astype(jnp.float32)                              # (T, Cin_p)

    # ---- norm1 (AdaIN1d) + mask, conv_1 as a single im2col matmul ----
    h = _adain_mask(x, g1_ref[0], b1_ref[0], mask)
    slab1 = _im2col(h, t_iota, K, pad).astype(jnp.bfloat16)       # (T, K*Cin_p)
    y = jnp.dot(slab1, w1_ref[...], preferred_element_type=jnp.float32)
    y = y + c1b_ref[...]                                          # (T, Cf_p)

    # ---- GELU(tanh); dropout(p=0 / eval) is identity ----
    y = _gelu_tanh(y)

    # ---- norm2 (AdaIN1d) + mask, conv_2 ----
    h2 = _adain_mask(y, g2_ref[0], b2_ref[0], mask)
    slab2 = _im2col(h2, t_iota, K, pad).astype(jnp.bfloat16)      # (T, K*Cf_p)
    y2 = jnp.dot(slab2, w2_ref[...], preferred_element_type=jnp.float32)
    y2 = y2 + c2b_ref[...]                                        # (T, Cout_p)

    # ---- final mask; lane-dense store (Cout padded to 128) ----
    o_ref[0] = (y2 * mask).astype(o_ref.dtype)


def conditional_ffn(x, lengths, s, params):
    """x: (B, T, Cin) channels-last, lengths: (B,) int32 valid lengths,
    s: (B, style_dim) -> (B, T, Cout)."""
    B, T, Cin = x.shape
    w1, c1b = params["w1"], params["b1"]       # (K, Cin, Cf), (Cf,)
    w2, c2b = params["w2"], params["b2"]       # (K, Cf, Cout), (Cout,)
    K, _, Cf = w1.shape
    Cout = w2.shape[2]

    # Pad channel dims up to lane multiples (128): every block and the output
    # store become lane-dense.  Padded channels are exact zeros through every
    # stage (zero gamma/beta/weights/bias), so slicing at the end is exact.
    Cin_p, Cf_p, Cout_p = (_round_up(c, _LANE) for c in (Cin, Cf, Cout))

    # style FC (glue, plain JAX): Linear(style_dim, 2*C) -> chunk(gamma, beta).
    # Fold the "+1" of (1+gamma) on the host so the kernel uses it directly.
    h1 = s @ params["fc1_w"].T + params["fc1_b"]                  # (B, 2*Cin)
    g1p, beta1 = 1.0 + h1[:, :Cin], h1[:, Cin:]
    h2 = s @ params["fc2_w"].T + params["fc2_b"]                  # (B, 2*Cf)
    g2p, beta2 = 1.0 + h2[:, :Cf], h2[:, Cf:]

    def pad_last(a, tgt):
        return jnp.pad(a, [(0, 0)] * (a.ndim - 1) + [(0, tgt - a.shape[-1])])

    x_p = pad_last(x, Cin_p)
    g1p = pad_last(g1p, Cin_p).reshape(B, 1, Cin_p).astype(jnp.float32)
    beta1 = pad_last(beta1, Cin_p).reshape(B, 1, Cin_p).astype(jnp.float32)
    g2p = pad_last(g2p, Cf_p).reshape(B, 1, Cf_p).astype(jnp.float32)
    beta2 = pad_last(beta2, Cf_p).reshape(B, 1, Cf_p).astype(jnp.float32)

    # Conv weights: pad channels, fold the K taps into one bf16 matrix so each
    # conv is a single MXU dot with contraction dim K*C (instead of K tiny dots).
    w1_r = jnp.pad(w1, ((0, 0), (0, Cin_p - Cin), (0, Cf_p - Cf))
                   ).reshape(K * Cin_p, Cf_p).astype(jnp.bfloat16)
    w2_r = jnp.pad(w2, ((0, 0), (0, Cf_p - Cf), (0, Cout_p - Cout))
                   ).reshape(K * Cf_p, Cout_p).astype(jnp.bfloat16)
    c1b_r = pad_last(c1b, Cf_p).reshape(1, Cf_p).astype(jnp.float32)
    c2b_r = pad_last(c2b, Cout_p).reshape(1, Cout_p).astype(jnp.float32)

    lengths = lengths.astype(jnp.int32)

    kernel = functools.partial(_cond_ffn_kernel, kernel_size=K, seq_len=T)

    # Advisory cost estimate for XLA's scheduler around the custom call.
    flops = 2 * B * T * (K * Cin_p * Cf_p + K * Cf_p * Cout_p)
    bytes_accessed = 4 * B * T * (Cin_p + Cout_p) + 2 * K * (Cin_p * Cf_p + Cf_p * Cout_p)
    cost = pl.CostEstimate(flops=flops, transcendentals=B * T * Cf_p,
                           bytes_accessed=bytes_accessed)

    # TODO(synk): for very long sequences / wide channels, tile over T (separate
    # stats pass for the InstanceNorms + haloed conv tiles) to fit v7x's 64 MiB VMEM;
    # full-T blocks per batch element are fine at these shapes.
    out_p = pl.pallas_call(
        kernel,
        out_shape=jax.ShapeDtypeStruct((B, T, Cout_p), x.dtype),
        grid_spec=pltpu.PrefetchScalarGridSpec(
            num_scalar_prefetch=1,                                 # lengths -> SMEM
            grid=(B,),
            in_specs=[
                pl.BlockSpec((1, T, Cin_p), lambda b, lens: (b, 0, 0)),   # x
                pl.BlockSpec((1, 1, Cin_p), lambda b, lens: (b, 0, 0)),   # 1+gamma1
                pl.BlockSpec((1, 1, Cin_p), lambda b, lens: (b, 0, 0)),   # beta1
                pl.BlockSpec((1, 1, Cf_p), lambda b, lens: (b, 0, 0)),    # 1+gamma2
                pl.BlockSpec((1, 1, Cf_p), lambda b, lens: (b, 0, 0)),    # beta2
                pl.BlockSpec((K * Cin_p, Cf_p), lambda b, lens: (0, 0)),  # conv1 W (resident)
                pl.BlockSpec((1, Cf_p), lambda b, lens: (0, 0)),          # conv1 b
                pl.BlockSpec((K * Cf_p, Cout_p), lambda b, lens: (0, 0)), # conv2 W (resident)
                pl.BlockSpec((1, Cout_p), lambda b, lens: (0, 0)),        # conv2 b
            ],
            out_specs=pl.BlockSpec((1, T, Cout_p), lambda b, lens: (b, 0, 0)),
        ),
        compiler_params=pltpu.CompilerParams(
            dimension_semantics=("parallel",),        # batch independent: both TCs on v7x
            vmem_limit_bytes=48 * 1024 * 1024),       # headroom under v7x's 64 MiB
        cost_estimate=cost,
    )(lengths, x_p, g1p, beta1, g2p, beta2, w1_r, c1b_r, w2_r, c2b_r)

    return out_p[:, :, :Cout]


# ----------------------------- pure-JAX reference -----------------------------

def _adain_ref(x, gamma, beta):
    mean = jnp.mean(x, axis=1, keepdims=True)
    var = jnp.mean(jnp.square(x - mean), axis=1, keepdims=True)
    xn = (x - mean) * jax.lax.rsqrt(var + _EPS)
    return (1.0 + gamma[:, None, :]) * xn + beta[:, None, :]


def _conv1d_ref(x, w, b):
    # x: (B, T, Ci); w: (K, Ci, Co); b: (Co,); padding=(K-1)//2
    K = w.shape[0]
    T = x.shape[1]
    pad = (K - 1) // 2
    xp = jnp.pad(x, ((0, 0), (pad, pad), (0, 0)))
    out = jnp.zeros((x.shape[0], T, w.shape[2]), jnp.float32) + b
    for dk in range(K):
        out = out + jnp.einsum("btc,cd->btd", xp[:, dk:dk + T, :], w[dk])
    return out


def conditional_ffn_ref(x, x_mask, s, params):
    Cin = x.shape[2]
    Cf = params["w1"].shape[2]
    h1 = s @ params["fc1_w"].T + params["fc1_b"]
    g1, b1 = h1[:, :Cin], h1[:, Cin:]
    h2 = s @ params["fc2_w"].T + params["fc2_b"]
    g2, b2 = h2[:, :Cf], h2[:, Cf:]

    y = _adain_ref(x, g1, b1)
    y = _conv1d_ref(y * x_mask, params["w1"], params["b1"])
    y = _gelu_tanh(y)
    y = _adain_ref(y, g2, b2)
    y = _conv1d_ref(y * x_mask, params["w2"], params["b2"])
    return y * x_mask


# ----------------------------------- main -------------------------------------

if __name__ == "__main__":
    B, T = 2, 16
    Cin, Cf, Cout = 4, 8, 4
    style_dim, K = 8, 3

    key = jax.random.PRNGKey(0)
    ks = jax.random.split(key, 10)

    params = {
        "fc1_w": 0.2 * jax.random.normal(ks[0], (2 * Cin, style_dim), jnp.float32),
        "fc1_b": 0.1 * jax.random.normal(ks[1], (2 * Cin,), jnp.float32),
        "fc2_w": 0.2 * jax.random.normal(ks[2], (2 * Cf, style_dim), jnp.float32),
        "fc2_b": 0.1 * jax.random.normal(ks[3], (2 * Cf,), jnp.float32),
        "w1": 0.3 * jax.random.normal(ks[4], (K, Cin, Cf), jnp.float32),
        "b1": 0.1 * jax.random.normal(ks[5], (Cf,), jnp.float32),
        "w2": 0.3 * jax.random.normal(ks[6], (K, Cf, Cout), jnp.float32),
        "b2": 0.1 * jax.random.normal(ks[7], (Cout,), jnp.float32),
    }

    x = jax.random.normal(ks[8], (B, T, Cin), jnp.float32)
    s = jax.random.normal(ks[9], (B, style_dim), jnp.float32)
    # per-batch valid lengths: first full, second length 12
    lengths = jnp.array([T, 12], dtype=jnp.int32)
    x_mask = (jnp.arange(T)[None, :] < lengths[:, None]).astype(jnp.float32)
    x_mask = x_mask.reshape(B, T, 1)

    out = jax.block_until_ready(conditional_ffn(x, lengths, s, params))
    ref = jax.block_until_ready(conditional_ffn_ref(x, x_mask, s, params))
    # bf16 MXU operands (f32 accumulation) -> slightly looser tolerance
    np.testing.assert_allclose(np.asarray(out), np.asarray(ref), rtol=2e-2, atol=2e-2)

    # TODO(synk): nn.Dropout(p_dropout) is treated as identity (eval / p=0.0).
    print("KERNEL_OK")
</pallas_src>

<mosaic_0001>
module attributes {stable_mosaic.version = 11 : i64} {
  func.func @_cond_ffn_kernel(%arg0: i32, %arg1: memref<2xi32, #tpu.memory_space<smem>>, %arg2: memref<1x16x128xf32, #tpu.memory_space<vmem>>, %arg3: memref<1x1x128xf32, #tpu.memory_space<vmem>>, %arg4: memref<1x1x128xf32, #tpu.memory_space<vmem>>, %arg5: memref<1x1x128xf32, #tpu.memory_space<vmem>>, %arg6: memref<1x1x128xf32, #tpu.memory_space<vmem>>, %arg7: memref<384x128xbf16, #tpu.memory_space<vmem>>, %arg8: memref<1x128xf32, #tpu.memory_space<vmem>>, %arg9: memref<384x128xbf16, #tpu.memory_space<vmem>>, %arg10: memref<1x128xf32, #tpu.memory_space<vmem>>, %arg11: memref<1x16x128xf32, #tpu.memory_space<vmem>>) attributes {dimension_semantics = [#tpu.dimension_semantics<parallel>], iteration_bounds = array<i64: 2>, scalar_prefetch = 1 : i64, scratch_operands = 0 : i64, tpu.core_type = #tpu.core_type<tc>, window_params = [{transform_indices = @transform_0, window_bounds = array<i64: 1, 16, 128>}, {transform_indices = @transform_1, window_bounds = array<i64: 1, 1, 128>}, {transform_indices = @transform_2, window_bounds = array<i64: 1, 1, 128>}, {transform_indices = @transform_3, window_bounds = array<i64: 1, 1, 128>}, {transform_indices = @transform_4, window_bounds = array<i64: 1, 1, 128>}, {pipeline_mode = #tpu.pipeline_mode<synchronous>, transform_indices = @transform_5, window_bounds = array<i64: 384, 128>}, {pipeline_mode = #tpu.pipeline_mode<synchronous>, transform_indices = @transform_6, window_bounds = array<i64: 1, 128>}, {pipeline_mode = #tpu.pipeline_mode<synchronous>, transform_indices = @transform_7, window_bounds = array<i64: 384, 128>}, {pipeline_mode = #tpu.pipeline_mode<synchronous>, transform_indices = @transform_8, window_bounds = array<i64: 1, 128>}, {transform_indices = @transform_9, window_bounds = array<i64: 1, 16, 128>}]} {
    %0 = arith.index_cast %arg0 : i32 to index
    %1 = memref.load %arg1[%0] : memref<2xi32, #tpu.memory_space<smem>>
    %2 = tpu.iota {dimensions = array<i32: 0>} : vector<16x1xi32>
    %3 = vector.broadcast %1 : i32 to vector<16x1xi32>
    %4 = arith.cmpi slt, %2, %3 : vector<16x1xi32>
    %5 = arith.extui %4 : vector<16x1xi1> to vector<16x1xi32>
    %6 = arith.sitofp %5 : vector<16x1xi32> to vector<16x1xf32>
    %c0 = arith.constant 0 : index
    %c0_0 = arith.constant 0 : index
    %c0_1 = arith.constant 0 : index
    %7 = vector.load %arg2[%c0, %c0_0, %c0_1] : memref<1x16x128xf32, #tpu.memory_space<vmem>>, vector<1x16x128xf32>
    %8 = vector.shape_cast %7 : vector<1x16x128xf32> to vector<16x128xf32>
    %c0_2 = arith.constant 0 : index
    %c0_3 = arith.constant 0 : index
    %c0_4 = arith.constant 0 : index
    %9 = vector.load %arg3[%c0_2, %c0_3, %c0_4] : memref<1x1x128xf32, #tpu.memory_space<vmem>>, vector<1x1x128xf32>
    %10 = vector.shape_cast %9 : vector<1x1x128xf32> to vector<1x128xf32>
    %c0_5 = arith.constant 0 : index
    %c0_6 = arith.constant 0 : index
    %c0_7 = arith.constant 0 : index
    %11 = vector.load %arg4[%c0_5, %c0_6, %c0_7] : memref<1x1x128xf32, #tpu.memory_space<vmem>>, vector<1x1x128xf32>
    %12 = vector.shape_cast %11 : vector<1x1x128xf32> to vector<1x128xf32>
    %cst = arith.constant dense<0.000000e+00> : vector<128xf32>
    %13 = vector.multi_reduction <add>, %8, %cst [0] : vector<16x128xf32> to vector<128xf32>
    %14 = vector.shape_cast %13 : vector<128xf32> to vector<1x128xf32>
    %cst_8 = arith.constant 6.250000e-02 : f32
    %15 = vector.broadcast %cst_8 : f32 to vector<1x128xf32>
    %16 = arith.mulf %14, %15 : vector<1x128xf32>
    %17 = arith.mulf %8, %8 : vector<16x128xf32>
    %cst_9 = arith.constant dense<0.000000e+00> : vector<128xf32>
    %18 = vector.multi_reduction <add>, %17, %cst_9 [0] : vector<16x128xf32> to vector<128xf32>
    %19 = vector.shape_cast %18 : vector<128xf32> to vector<1x128xf32>
    %cst_10 = arith.constant 6.250000e-02 : f32
    %20 = vector.broadcast %cst_10 : f32 to vector<1x128xf32>
    %21 = arith.mulf %19, %20 : vector<1x128xf32>
    %22 = arith.mulf %16, %16 : vector<1x128xf32>
    %23 = arith.subf %21, %22 : vector<1x128xf32>
    %cst_11 = arith.constant 9.99999974E-6 : f32
    %24 = vector.broadcast %cst_11 : f32 to vector<1x128xf32>
    %25 = arith.addf %23, %24 : vector<1x128xf32>
    %26 = math.rsqrt %25 : vector<1x128xf32>
    %27 = arith.mulf %10, %26 : vector<1x128xf32>
    %28 = arith.mulf %16, %27 : vector<1x128xf32>
    %29 = arith.subf %12, %28 : vector<1x128xf32>
    %30 = vector.broadcast %27 : vector<1x128xf32> to vector<16x128xf32>
    %31 = arith.mulf %8, %30 : vector<16x128xf32>
    %32 = vector.broadcast %29 : vector<1x128xf32> to vector<16x128xf32>
    %33 = arith.addf %31, %32 : vector<16x128xf32>
    %34 = vector.broadcast %6 : vector<16x1xf32> to vector<16x128xf32>
    %35 = arith.mulf %33, %34 : vector<16x128xf32>
    %c1_i32 = arith.constant 1 : i32
    %36 = tpu.dynamic_rotate %35 by %c1_i32 dim 0 : vector<16x128xf32>, i32 -> vector<16x128xf32>
    %c1_i32_12 = arith.constant 1 : i32
    %37 = vector.broadcast %c1_i32_12 : i32 to vector<16x1xi32>
    %38 = arith.cmpi sge, %2, %37 : vector<16x1xi32>
    %c17_i32 = arith.constant 17 : i32
    %39 = vector.broadcast %c17_i32 : i32 to vector<16x1xi32>
    %40 = arith.cmpi slt, %2, %39 : vector<16x1xi32>
    %41 = arith.andi %38, %40 : vector<16x1xi1>
    %cst_13 = arith.constant 0.000000e+00 : f32
    %42 = vector.shape_cast %41 : vector<16x1xi1> to vector<16x1xi1>
    %43 = vector.broadcast %42 : vector<16x1xi1> to vector<16x128xi1>
    %44 = vector.broadcast %cst_13 : f32 to vector<16x128xf32>
    %45 = arith.select %43, %36, %44 : vector<16x128xi1>, vector<16x128xf32>
    %c15_i32 = arith.constant 15 : i32
    %46 = tpu.dynamic_rotate %35 by %c15_i32 dim 0 : vector<16x128xf32>, i32 -> vector<16x128xf32>
    %c-1_i32 = arith.constant -1 : i32
    %47 = vector.broadcast %c-1_i32 : i32 to vector<16x1xi32>
    %48 = arith.cmpi sge, %2, %47 : vector<16x1xi32>
    %c15_i32_14 = arith.constant 15 : i32
    %49 = vector.broadcast %c15_i32_14 : i32 to vector<16x1xi32>
    %50 = arith.cmpi slt, %2, %49 : vector<16x1xi32>
    %51 = arith.andi %48, %50 : vector<16x1xi1>
    %cst_15 = arith.constant 0.000000e+00 : f32
    %52 = vector.shape_cast %51 : vector<16x1xi1> to vector<16x1xi1>
    %53 = vector.broadcast %52 : vector<16x1xi1> to vector<16x128xi1>
    %54 = vector.broadcast %cst_15 : f32 to vector<16x128xf32>
    %55 = arith.select %53, %46, %54 : vector<16x128xi1>, vector<16x128xf32>
    %56 = tpu.concatenate %45, %35, %55 in 1 : vector<16x128xf32>, vector<16x128xf32>, vector<16x128xf32> -> vector<16x384xf32>
    %57 = arith.truncf %56 : vector<16x384xf32> to vector<16x384xbf16>
    %c0_16 = arith.constant 0 : index
    %c0_17 = arith.constant 0 : index
    %58 = vector.load %arg7[%c0_16, %c0_17] : memref<384x128xbf16, #tpu.memory_space<vmem>>, vector<384x128xbf16>
    %cst_18 = arith.constant dense<0.000000e+00> : vector<16x128xf32>
    %59 = tpu.matmul %57, %58, %cst_18 {dimension_numbers = #tpu.dot_dimension_numbers<[1], [0], [0], [1], [0, 0, 1, 1], [], []>} : vector<16x384xbf16>, vector<384x128xbf16>, vector<16x128xf32> -> vector<16x128xf32>
    %c0_19 = arith.constant 0 : index
    %c0_20 = arith.constant 0 : index
    %60 = vector.load %arg8[%c0_19, %c0_20] : memref<1x128xf32, #tpu.memory_space<vmem>>, vector<1x128xf32>
    %61 = vector.broadcast %60 : vector<1x128xf32> to vector<16x128xf32>
    %62 = arith.addf %59, %61 : vector<16x128xf32>
    %cst_21 = arith.constant 5.000000e-01 : f32
    %63 = vector.broadcast %cst_21 : f32 to vector<16x128xf32>
    %64 = arith.mulf %63, %62 : vector<16x128xf32>
    %cst_22 = arith.constant 4.471500e-02 : f32
    %65 = vector.broadcast %cst_22 : f32 to vector<16x128xf32>
    %66 = arith.mulf %65, %62 : vector<16x128xf32>
    %67 = arith.mulf %66, %62 : vector<16x128xf32>
    %68 = arith.mulf %67, %62 : vector<16x128xf32>
    %69 = arith.addf %62, %68 : vector<16x128xf32>
    %cst_23 = arith.constant 0.797884583 : f32
    %70 = vector.broadcast %cst_23 : f32 to vector<16x128xf32>
    %71 = arith.mulf %70, %69 : vector<16x128xf32>
    %72 = math.tanh %71 : vector<16x128xf32>
    %cst_24 = arith.constant 1.000000e+00 : f32
    %73 = vector.broadcast %cst_24 : f32 to vector<16x128xf32>
    %74 = arith.addf %73, %72 : vector<16x128xf32>
    %75 = arith.mulf %64, %74 : vector<16x128xf32>
    %c0_25 = arith.constant 0 : index
    %c0_26 = arith.constant 0 : index
    %c0_27 = arith.constant 0 : index
    %76 = vector.load %arg5[%c0_25, %c0_26, %c0_27] : memref<1x1x128xf32, #tpu.memory_space<vmem>>, vector<1x1x128xf32>
    %77 = vector.shape_cast %76 : vector<1x1x128xf32> to vector<1x128xf32>
    %c0_28 = arith.constant 0 : index
    %c0_29 = arith.constant 0 : index
    %c0_30 = arith.constant 0 : index
    %78 = vector.load %arg6[%c0_28, %c0_29, %c0_30] : memref<1x1x128xf32, #tpu.memory_space<vmem>>, vector<1x1x128xf32>
    %79 = vector.shape_cast %78 : vector<1x1x128xf32> to vector<1x128xf32>
    %cst_31 = arith.constant dense<0.000000e+00> : vector<128xf32>
    %80 = vector.multi_reduction <add>, %75, %cst_31 [0] : vector<16x128xf32> to vector<128xf32>
    %81 = vector.shape_cast %80 : vector<128xf32> to vector<1x128xf32>
    %cst_32 = arith.constant 6.250000e-02 : f32
    %82 = vector.broadcast %cst_32 : f32 to vector<1x128xf32>
    %83 = arith.mulf %81, %82 : vector<1x128xf32>
    %84 = arith.mulf %75, %75 : vector<16x128xf32>
    %cst_33 = arith.constant dense<0.000000e+00> : vector<128xf32>
    %85 = vector.multi_reduction <add>, %84, %cst_33 [0] : vector<16x128xf32> to vector<128xf32>
    %86 = vector.shape_cast %85 : vector<128xf32> to vector<1x128xf32>
    %cst_34 = arith.constant 6.250000e-02 : f32
    %87 = vector.broadcast %cst_34 : f32 to vector<1x128xf32>
    %88 = arith.mulf %86, %87 : vector<1x128xf32>
    %89 = arith.mulf %83, %83 : vector<1x128xf32>
    %90 = arith.subf %88, %89 : vector<1x128xf32>
    %cst_35 = arith.constant 9.99999974E-6 : f32
    %91 = vector.broadcast %cst_35 : f32 to vector<1x128xf32>
    %92 = arith.addf %90, %91 : vector<1x128xf32>
    %93 = math.rsqrt %92 : vector<1x128xf32>
    %94 = arith.mulf %77, %93 : vector<1x128xf32>
    %95 = arith.mulf %83, %94 : vector<1x128xf32>
    %96 = arith.subf %79, %95 : vector<1x128xf32>
    %97 = vector.broadcast %94 : vector<1x128xf32> to vector<16x128xf32>
    %98 = arith.mulf %75, %97 : vector<16x128xf32>
    %99 = vector.broadcast %96 : vector<1x128xf32> to vector<16x128xf32>
    %100 = arith.addf %98, %99 : vector<16x128xf32>
    %101 = vector.broadcast %6 : vector<16x1xf32> to vector<16x128xf32>
    %102 = arith.mulf %100, %101 : vector<16x128xf32>
    %c1_i32_36 = arith.constant 1 : i32
    %103 = tpu.dynamic_rotate %102 by %c1_i32_36 dim 0 : vector<16x128xf32>, i32 -> vector<16x128xf32>
    %c1_i32_37 = arith.constant 1 : i32
    %104 = vector.broadcast %c1_i32_37 : i32 to vector<16x1xi32>
    %105 = arith.cmpi sge, %2, %104 : vector<16x1xi32>
    %c17_i32_38 = arith.constant 17 : i32
    %106 = vector.broadcast %c17_i32_38 : i32 to vector<16x1xi32>
    %107 = arith.cmpi slt, %2, %106 : vector<16x1xi32>
    %108 = arith.andi %105, %107 : vector<16x1xi1>
    %cst_39 = arith.constant 0.000000e+00 : f32
    %109 = vector.shape_cast %108 : vector<16x1xi1> to vector<16x1xi1>
    %110 = vector.broadcast %109 : vector<16x1xi1> to vector<16x128xi1>
    %111 = vector.broadcast %cst_39 : f32 to vector<16x128xf32>
    %112 = arith.select %110, %103, %111 : vector<16x128xi1>, vector<16x128xf32>
    %c15_i32_40 = arith.constant 15 : i32
    %113 = tpu.dynamic_rotate %102 by %c15_i32_40 dim 0 : vector<16x128xf32>, i32 -> vector<16x128xf32>
    %c-1_i32_41 = arith.constant -1 : i32
    %114 = vector.broadcast %c-1_i32_41 : i32 to vector<16x1xi32>
    %115 = arith.cmpi sge, %2, %114 : vector<16x1xi32>
    %c15_i32_42 = arith.constant 15 : i32
    %116 = vector.broadcast %c15_i32_42 : i32 to vector<16x1xi32>
    %117 = arith.cmpi slt, %2, %116 : vector<16x1xi32>
    %118 = arith.andi %115, %117 : vector<16x1xi1>
    %cst_43 = arith.constant 0.000000e+00 : f32
    %119 = vector.shape_cast %118 : vector<16x1xi1> to vector<16x1xi1>
    %120 = vector.broadcast %119 : vector<16x1xi1> to vector<16x128xi1>
    %121 = vector.broadcast %cst_43 : f32 to vector<16x128xf32>
    %122 = arith.select %120, %113, %121 : vector<16x128xi1>, vector<16x128xf32>
    %123 = tpu.concatenate %112, %102, %122 in 1 : vector<16x128xf32>, vector<16x128xf32>, vector<16x128xf32> -> vector<16x384xf32>
    %124 = arith.truncf %123 : vector<16x384xf32> to vector<16x384xbf16>
    %c0_44 = arith.constant 0 : index
    %c0_45 = arith.constant 0 : index
    %125 = vector.load %arg9[%c0_44, %c0_45] : memref<384x128xbf16, #tpu.memory_space<vmem>>, vector<384x128xbf16>
    %cst_46 = arith.constant dense<0.000000e+00> : vector<16x128xf32>
    %126 = tpu.matmul %124, %125, %cst_46 {dimension_numbers = #tpu.dot_dimension_numbers<[1], [0], [0], [1], [0, 0, 1, 1], [], []>} : vector<16x384xbf16>, vector<384x128xbf16>, vector<16x128xf32> -> vector<16x128xf32>
    %c0_47 = arith.constant 0 : index
    %c0_48 = arith.constant 0 : index
    %127 = vector.load %arg10[%c0_47, %c0_48] : memref<1x128xf32, #tpu.memory_space<vmem>>, vector<1x128xf32>
    %128 = vector.broadcast %127 : vector<1x128xf32> to vector<16x128xf32>
    %129 = arith.addf %126, %128 : vector<16x128xf32>
    %130 = vector.broadcast %6 : vector<16x1xf32> to vector<16x128xf32>
    %131 = arith.mulf %129, %130 : vector<16x128xf32>
    %c0_49 = arith.constant 0 : index
    %c0_50 = arith.constant 0 : index
    %c0_51 = arith.constant 0 : index
    %132 = vector.load %arg11[%c0_49, %c0_50, %c0_51] : memref<1x16x128xf32, #tpu.memory_space<vmem>>, vector<1x16x128xf32>
    %133 = vector.shape_cast %132 : vector<1x16x128xf32> to vector<16x128xf32>
    %134 = vector.shape_cast %131 : vector<16x128xf32> to vector<1x16x128xf32>
    tpu.vector_store %arg11[%c0_49, %c0_50, %c0_51], %134 {strides = array<i32>} : memref<1x16x128xf32, #tpu.memory_space<vmem>>, vector<1x16x128xf32>,
    return
  }
  func.func @transform_0(%arg0: i32, %arg1: memref<2xi32, #tpu.memory_space<smem>>) -> (i32, i32, i32) {
    %c0_i32 = arith.constant 0 : i32
    %c0_i32_0 = arith.constant 0 : i32
    %c0_i32_1 = arith.constant 0 : i32
    return %arg0, %c0_i32, %c0_i32_0 : i32, i32, i32
  }
  func.func @transform_1(%arg0: i32, %arg1: memref<2xi32, #tpu.memory_space<smem>>) -> (i32, i32, i32) {
    %c0_i32 = arith.constant 0 : i32
    %c0_i32_0 = arith.constant 0 : i32
    %c0_i32_1 = arith.constant 0 : i32
    return %arg0, %c0_i32, %c0_i32_0 : i32, i32, i32
  }
  func.func @transform_2(%arg0: i32, %arg1: memref<2xi32, #tpu.memory_space<smem>>) -> (i32, i32, i32) {
    %c0_i32 = arith.constant 0 : i32
    %c0_i32_0 = arith.constant 0 : i32
    %c0_i32_1 = arith.constant 0 : i32
    return %arg0, %c0_i32, %c0_i32_0 : i32, i32, i32
  }
  func.func @transform_3(%arg0: i32, %arg1: memref<2xi32, #tpu.memory_space<smem>>) -> (i32, i32, i32) {
    %c0_i32 = arith.constant 0 : i32
    %c0_i32_0 = arith.constant 0 : i32
    %c0_i32_1 = arith.constant 0 : i32
    return %arg0, %c0_i32, %c0_i32_0 : i32, i32, i32
  }
  func.func @transform_4(%arg0: i32, %arg1: memref<2xi32, #tpu.memory_space<smem>>) -> (i32, i32, i32) {
    %c0_i32 = arith.constant 0 : i32
    %c0_i32_0 = arith.constant 0 : i32
    %c0_i32_1 = arith.constant 0 : i32
    return %arg0, %c0_i32, %c0_i32_0 : i32, i32, i32
  }
  func.func @transform_5(%arg0: i32, %arg1: memref<2xi32, #tpu.memory_space<smem>>) -> (i32, i32) {
    %c0_i32 = arith.constant 0 : i32
    %c0_i32_0 = arith.constant 0 : i32
    %c0_i32_1 = arith.constant 0 : i32
    return %c0_i32, %c0_i32_0 : i32, i32
  }
  func.func @transform_6(%arg0: i32, %arg1: memref<2xi32, #tpu.memory_space<smem>>) -> (i32, i32) {
    %c0_i32 = arith.constant 0 : i32
    %c0_i32_0 = arith.constant 0 : i32
    %c0_i32_1 = arith.constant 0 : i32
    return %c0_i32, %c0_i32_0 : i32, i32
  }
  func.func @transform_7(%arg0: i32, %arg1: memref<2xi32, #tpu.memory_space<smem>>) -> (i32, i32) {
    %c0_i32 = arith.constant 0 : i32
    %c0_i32_0 = arith.constant 0 : i32
    %c0_i32_1 = arith.constant 0 : i32
    return %c0_i32, %c0_i32_0 : i32, i32
  }
  func.func @transform_8(%arg0: i32, %arg1: memref<2xi32, #tpu.memory_space<smem>>) -> (i32, i32) {
    %c0_i32 = arith.constant 0 : i32
    %c0_i32_0 = arith.constant 0 : i32
    %c0_i32_1 = arith.constant 0 : i32
    return %c0_i32, %c0_i32_0 : i32, i32
  }
  func.func @transform_9(%arg0: i32, %arg1: memref<2xi32, #tpu.memory_space<smem>>) -> (i32, i32, i32) {
    %c0_i32 = arith.constant 0 : i32
    %c0_i32_0 = arith.constant 0 : i32
    %c0_i32_1 = arith.constant 0 : i32
    return %arg0, %c0_i32, %c0_i32_0 : i32, i32, i32
  }
}

</mosaic_0001>

<bundles_post_ra>
// kernel: tpu_custom_call.1
= control target key start
LH: loop header
LB: loop body
LE: loop exit
PB: predicated region body
PF: predicated region fallthrough
CT: control target
= control target key end

     0   :  { %s1802_s13 = smov [#allocation3]   ;;  %s2175_s0 = inlined_call_operand.hbm [shape: s32[2], index: 0, kind: input, shape index: {}]   ;;  %s2176_s1 = inlined_call_operand.hbm [shape: f32[2,16,128], index: 1, kind: input, shape index: {}]   ;;  %s2177_s2 = inlined_call_operand.vmem [shape: f32[2,1,128], index: 2, kind: input, shape index: {}]   ;;  %s2178_s3 = inlined_call_operand.vmem [shape: f32[2,1,128], index: 3, kind: input, shape index: {}]   ;;  %s2179_s4 = inlined_call_operand.vmem [shape: f32[2,1,128], index: 4, kind: input, shape index: {}]   ;;  %s2180_s5 = inlined_call_operand.vmem [shape: f32[2,1,128], index: 5, kind: input, shape index: {}]   ;;  %s2181_s6 = inlined_call_operand.hbm [shape: bf16[384,128], index: 6, kind: input, shape index: {}]   ;;  %s2182_s7 = inlined_call_operand.vmem [shape: f32[1,128], index: 7, kind: input, shape index: {}]   ;;  %s2183_s8 = inlined_call_operand.hbm [shape: bf16[384,128], index: 8, kind: input, shape index: {}]   ;;  %s2184_s9 = inlined_call_operand.vmem [shape: f32[1,128], index: 9, kind: input, shape index: {}]   ;;  %s2185_s10 = inlined_call_operand.hbm [shape: f32[2,16,128], index: 10, kind: output, shape index: {}]  }
   0x1   :  { %2190 = sst [smem:[#allocation16_spill]] %s2181_s6 }
   0x2   :  { %2191 = sst [smem:[#allocation17_spill]] %s2183_s8 }
   0x3   :  { %16 = dma.hbm_to_smem %s2175_s0, 16, %s1802_s13, [#allocation2] }
   0x4   :  { %1772 = dma.done.wait [#allocation2], 16 }
   0x5   :  { %1773 = vsyncadd [#allocation2], 4294967280 }
   0x6   :  { %18 = sfence }
   0x7   :  { %19 = vsyncpa [#allocation5], 0 }
   0x8   :  { %21 = vsyncpa [#allocation5 + $0x1], 0 }
   0x9   :  { %22 = vsyncpa [#allocation8], 0 }
   0xa   :  { %23 = vsyncpa [#allocation6], 0 }
   0xb   :  { %25 = vsyncpa [#allocation6 + $0x1], 0  ;;  %s1874_s16 = smov 0   ;;  %s1876_s17 = smov 0  }
   0xc   :  { %s1878_s18 = smov 0   ;;  %s1880_s19 = smov 0  }
   0xd LB: > { %s1895_s0 = sadd.s32 4294967295, %s1800_s19   ;;  %s1323_s20 = sadd.s32 4294967294, %s1800_s19   ;;  %s1800_s19 = sphi %s1880_s19, %s2217_s19   ;;  %s1796_s18 = sphi %s1878_s18, %s2216_s18   ;;  %s1792_s17 = sphi %s1876_s17, %s2215_s17   ;;  %s1788_s16 = sphi %s1874_s16, %s2214_s16  }
   0xe   : > { %p51_p0 = scmp.ne.s32.totalorder %s1792_s17, %s1788_s16  ;;  %p2186_p1 = scmp.eq.s32.totalorder %s1895_s0, 0 }
   0xf   : > { %p269_p3 = scmp.eq.s32.totalorder %s1323_s20, 1  ;;  %p1324_p5 = scmp.ge.s32.totalorder %s1800_s19, 1 }
  0x10   : > { %p1904_p4 = por %p2186_p1, %p51_p0  ;;  %p276_p7 = scmp.lt.s32.totalorder %s1800_s19, 3 }
  0x11   : > { %p1909_p6 = por %p269_p3, %p51_p0  ;;  %s1803_s24 = smov [#allocation7]  }
  0x12   : > { %s2192_s21 = scalar_select %p1904_p4, 1, 0 }
  0x13   : > { %s2193_s22 = scalar_select %p1909_p6, 1, 0 }
  0x14   : > { %p1914_p8 = pnand %p1324_p5, %p276_p7  ;;  %s288_s25 = sshll.u32 %s1803_s24, 4  ;;  %s289_s25 = int_to_ptr.vmem [resolvable:$true] %s288_s25 }
  0x15   : > { %s1804_s27 = smov [#allocation9]   ;;  %s1661_s29 = scalar_lea.vmem %s289_s25, 3072 }
  0x16   : > { %s2194_s23 = scalar_select %p1914_p8, 1, 0 }
  0x17   : > { %p1521_p9 = pneg %p1914_p8  ;;  %s304_s28 = sshll.u32 %s1804_s27, 4  ;;  %s305_s28 = int_to_ptr.vmem [resolvable:$true] %s304_s28 }
  0x18   : > { %p1662_p13 = scmp.ne.s32.totalorder %s289_s25, %s1661_s29  ;;  %p1669_p5 = scmp.lt.s32.totalorder %s289_s25, %s289_s25 }
  0x19   : > { %p1923_p11 = pnand %p1521_p9, %p2186_p1  ;;  %p1670_p7 = scmp.lt.s32.totalorder %s1661_s29, %s1661_s29 }
  0x1b   : > { %p1652_p12 = pneg %p1923_p11  ;;  %p1671_p10 = por %p1670_p7, %p1669_p5 }
  0x1d   : > { %p1664_p0 = pnand %p1662_p13, %p1652_p12 }
  0x1f   : > { %p1665_p3 = pneg %p1664_p0 }
  0x21   : > { %p1672_p9 = pnand %p1671_p10, %p1665_p3 }
  0x23   : > { %1675 = shalt.err (!%p1672_p9)
}
  0x24   : > { %s1805_s30 = smov 64   ;;  %s1806_s11 = smov 4  }
  0x25   : > { %s2196_s6 = sld [smem:[#allocation16_spill]]  ;;  %s1687_s14 = scalar_lea.vmem %s305_s28, 3072 }
  0x26   : > { %p1688_p1 = scmp.ne.s32.totalorder %s305_s28, %s1687_s14  ;;  %p1695_p2 = scmp.lt.s32.totalorder %s305_s28, %s305_s28 }
  0x27   : > { %p1696_p6 = scmp.lt.s32.totalorder %s1687_s14, %s1687_s14 }
  0x28   : > { %p1690_p13 = pnand %p1688_p1, %p1652_p12 }
  0x29   : > { %p1697_p5 = por %p1696_p6, %p1695_p2 }
  0x2a   : > { %p1691_p0 = pneg %p1690_p13 }
  0x2b   : > { %1524 = dma.hbm_to_vmem [thread:$0]  (!%p1923_p11), %s2196_s6, 3072, %s289_s25, [#allocation8], %s1805_s30, %s1805_s30, %s1806_s11  }
  0x2c   : > { %p1698_p10 = pnand %p1697_p5, %p1691_p0 }
  0x2e   : > { %1701 = shalt.err (!%p1698_p10)
}
  0x2f   : > { %s2197_s8 = sld [smem:[#allocation17_spill]]  ;;  %s1946_s24 = sadd.s32 1, %s1800_s19  }
  0x30   : > { %s38_s25 = sadd.s32 1, %s1796_s18  ;;  %s35_s26 = ssub.s32 %s1800_s19, %s1946_s24 }
  0x31   : > { %p45_p1 = scmp.ne.s32.totalorder %s1796_s18, %s1792_s17  ;;  %p36_p2 = scmp.eq.s32.totalorder %s35_s26, 0 }
  0x32   : > { %p46_p6 = scmp.eq.s32.totalorder %s1800_s19, 0  ;;  %p2198_p12 = scmp.eq.s32.totalorder %s1895_s0, 1 }
  0x33   : > { %p1538_p7 = scmp.lt.s32.totalorder %s1800_s19, 2  ;;  %s321_s12 = sand.u32 1, %s1796_s18  }
  0x34   : > { %p1956_p3 = por %p2198_p12, %p45_p1  ;;  %p47_p9 = por %p46_p6, %p45_p1 }
  0x35   : > { %1527 = dma.hbm_to_vmem [thread:$0]  (!%p1923_p11), %s2197_s8, 3072, %s305_s28, [#allocation8], %s1805_s30, %s1805_s30, %s1806_s11  }
  0x36   : > { %s2199_s27 = scalar_select %p1956_p3, 1, 0 }
  0x37   : > { %s1962_s29 = scalar_select %p36_p2, %s1796_s18, %s38_s25  }
  0x38   : > { %s1328_s13 = sshll.u32 %s321_s12, 4  ;;  %s1405_s28 = sshll.u32 %s1800_s19, 8 }
  0x39   : > { %2200 = sst [smem:[#allocation15_spill]] %s1962_s29  ;;  %s1969_s14 = scalar_lea.hbm %s2176_s1, %s1405_s28 }
  0x3a   : > { %s325_s15 = scalar_lea.vmem [#allocation4], %s1328_s13  ;;  %p1973_p11 = pnand %p1538_p7, %p47_p9 }
  0x3b   : > { %s332_s20 = sshll.u32 %s325_s15, 4  ;;  %s1977_s25 = scalar_lea.sflag [#allocation5], %s321_s12  ;;  %s1971_s20 = int_to_ptr.vmem [resolvable:$true] %s332_s20 }
  0x3c   : > { %s1702_s6 = scalar_lea.hbm %s1969_s14, 256  ;;  %p1704_p0 = pneg %p1973_p11 }
  0x3d   : > { %p1703_p13 = scmp.ne.s32.totalorder %s1969_s14, %s1702_s6  ;;  %s1707_s13 = scalar_lea.hbm %s2176_s1, 512 }
  0x3e   : > { %p1708_p1 = scmp.lt.s32.totalorder %s1969_s14, %s2176_s1  ;;  %p1709_p2 = scmp.lt.s32.totalorder %s1707_s13, %s1702_s6 }
  0x3f   : > { %p1705_p5 = pnand %p1704_p0, %p1703_p13 }
  0x40   : > { %p1710_p6 = por %p1709_p2, %p1708_p1 }
  0x41   : > { %p1706_p10 = pneg %p1705_p5 }
  0x43   : > { %p1711_p12 = pnand %p1710_p6, %p1706_p10 }
  0x45   : > { %1714 = shalt.err (!%p1711_p12)
}
  0x46   : > { %s1715_s12 = scalar_lea.vmem %s1971_s20, 256  ;;  %s1807_s8 = smov [#allocation4]  }
  0x47   : > { %p1716_p7 = scmp.ne.s32.totalorder %s1971_s20, %s1715_s12  ;;  %s1720_s29 = sshll.u32 %s1807_s8, 4  ;;  %s1721_s29 = int_to_ptr.vmem [resolvable:$false] %s1720_s29 }
  0x48   : > { %s1722_s28 = scalar_lea.vmem %s1721_s29, 512  ;;  %p1723_p5 = scmp.lt.s32.totalorder %s1971_s20, %s1721_s29 }
  0x49   : > { %p1718_p9 = pnand %p1716_p7, %p1704_p0  ;;  %p1724_p3 = scmp.lt.s32.totalorder %s1722_s28, %s1715_s12 }
  0x4b   : > { %p1719_p13 = pneg %p1718_p9  ;;  %p1725_p4 = por %p1724_p3, %p1723_p5 }
  0x4d   : > { %p1726_p8 = pnand %p1725_p4, %p1719_p13 }
  0x4f   : > { %1729 = shalt.err (!%p1726_p8)
}
  0x50   : > { %s1808_s6 = smov 128   ;;  %s1809_s30 = smov 8  }
  0x51   : > { %1531 = dma.hbm_to_vmem [thread:$0]  (!%p1973_p11), %s1969_s14, 256, %s1971_s20, %s1977_s25, %s1808_s6, %s1808_s6, %s1809_s30  }
  0x52   : > { %p2202_p0 = scmp.ne.s32.totalorder %s2194_s23, 0 }
  0x53   : > { %s2001_s8 = sand.u32 (!%p2202_p0), 1, %s1792_s17   ;;  %p2203_p4 = scmp.ne.s32.totalorder (!%p2202_p0), %s2192_s21, 0 }
  0x54   : > { %368 = sbr.rel (%p2202_p0) target bundleno = 663 (0x297), region = 56  ;;  %s1332_s29 = sshll.u32 (!%p2202_p0), %s2001_s8, 4 }
  0x55   : > { %s371_s13 = scalar_lea.sflag (!%p2202_p0), [#allocation5], %s2001_s8  ;;  %s2007_s11 = scalar_lea.vmem (!%p2202_p0), [#allocation4], %s1332_s29 }
  0x59   : > { %1775 = dma.done.wait (%p2203_p4), %s371_s13, 256  }
  0x5a   : > { %1777 = vsyncadd (%p2203_p4), %s371_s13, 4294967040  ;;  %p2204_p8 = scmp.eq.s32.totalorder %s1895_s0, 0 }
  0x5c   : > { %1779 = dma.done.wait (%p2204_p8), [#allocation8], 6144   ;;  %p2205_p3 = pmov %p2204_p8 }
  0x5d   : > { %v1810_v0 = vmov 0.0   ;;  %vm1811_vm0 = vmmov 0   ;;  %v1586_v1 = vld [vmem:[#allocation7 + $0x78] sm:$0xff]   ;;  %v1589_v4 = vld [vmem:[#allocation7 + $0x70] sm:$0xff]   ;;  %v1592_v7 = vld [vmem:[#allocation7 + $0x68] sm:$0xff]   ;;  %p429_p11 = scmp.lt.s32.totalorder %s1895_s0, 1  ;;  %v443_v48 = vlaneseq }
  0x5e   : > { %1781 = vsyncadd (%p2205_p3), [#allocation8], 4294961152  ;;  %1469 = vmatprep.subr.bf16.mxu1 %v1810_v0  ;;  %1485 = vmatprep.mubr.msk.bf16.mxu1 %vm1811_vm0, %v1810_v0  ;;  %v1587_v2 = vld [vmem:[#allocation7 + $0x38] sm:$0xff]   ;;  %v1590_v5 = vld [vmem:[#allocation7 + $0x30] sm:$0xff]   ;;  %s442_s23 = sld [smem:[#allocation3 + %s1895_s0]]  ;;  %vm1812_vm7 = vmmov 1  }
  0x5f   : > { %1407 = vmatprep.subr.bf16.mxu0 %v1586_v1  ;;  %v1588_v3 = vld [vmem:[#allocation7 + $0xb8] sm:$0xff]   ;;  %v1591_v6 = vld [vmem:[#allocation7 + $0xb0] sm:$0xff]   ;;  %v1593_v8 = vld [vmem:[#allocation7 + $0x28] sm:$0xff]   ;;  %s2032_s21 = scalar_select %p429_p11, %s1895_s0, 1  ;;  %v2039_v49 = vshrl.u32 %v443_v48, 7 }
  0x60   : > { %1408 = vmatpush3.bf16.msra.mxu0 %v1587_v2  ;;  %1470 = vmatpush3.bf16.msra.mxu1 %v1588_v3  ;;  %v1594_v9 = vld [vmem:[#allocation7 + $0xa8] sm:$0xff]   ;;  %v1595_v10 = vld [vmem:[#allocation7 + $0x60] sm:$0xff]   ;;  %v1598_v13 = vld [vmem:[#allocation7 + $0x58] sm:$0xff]   ;;  %s428_s25 = scalar_lea.vmem [#allocation10], %s1332_s29  ;;  %s1182_s13 = scalar_lea.sflag [#allocation6], %s2001_s8 }
  0x61   : > { %1409 = vmatprep.subr.bf16.mxu0 %v1589_v4  ;;  %1471 = vmatprep.subr.bf16.mxu1 %v1810_v0  ;;  %v1596_v11 = vld [vmem:[#allocation7 + $0x20] sm:$0xff]   ;;  %v1599_v14 = vld [vmem:[#allocation7 + $0x18] sm:$0xff]   ;;  %v1601_v16 = vld [vmem:[#allocation7 + $0x50] sm:$0xff]   ;;  %s431_s26 = scalar_lea.vmem %s2177_s2, %s2032_s21  ;;  %s434_s12 = scalar_lea.vmem %s2178_s3, %s2032_s21  ;;  %v2046_v51 = vsub.s32 0, %v2039_v49  ;;  %v445_v53 = vadd.s32 8, %v2039_v49  ;;  %vm505_vm3 = vcmp.ge.s32.totalorder %v2039_v49, 1 }
  0x62   : > { %v1597_v12 = vld [vmem:[#allocation7 + $0xa0] sm:$0xff]   ;;  %v1600_v15 = vld [vmem:[#allocation7 + $0x98] sm:$0xff]   ;;  %v1602_v17 = vld [vmem:[#allocation7 + $0x10] sm:$0xff]   ;;  %vm502_vm4 = vcmp.lt.s32.totalorder %v2039_v49, 1  ;;  %vm519_vm5 = vcmp.lt.s32.totalorder %v2039_v49, 7  ;;  %s440_s20 = scalar_lea.vmem %s2180_s5, %s2032_s21  ;;  %s1195_s15 = sshll.u32 %s428_s25, 4  ;;  %s2131_s15 = int_to_ptr.vmem [resolvable:$true] %s1195_s15 }
  0x63   : > { %v1603_v18 = vld [vmem:[#allocation7 + $0x90] sm:$0xff]   ;;  %v1604_v19 = vld [vmem:[#allocation7 + $0x48] sm:$0xff]   ;;  %v1607_v22 = vld [vmem:[#allocation7 + $0x40] sm:$0xff]   ;;  %vm525_vm6 = vcmp.lt.s32.totalorder %v445_v53, 15  ;;  %s1730_s29 = scalar_lea.vmem %s2131_s15, 256  ;;  %p2210_p1 = scmp.ne.s32.totalorder %s2199_s27, 0 }
  0x64   : > { %1410 = vmatpush3.bf16.msra.mxu0 %v1590_v5  ;;  %1472 = vmatpush3.bf16.msra.mxu1 %v1591_v6  ;;  %v1605_v20 = vld [vmem:[#allocation7 + $0x8] sm:$0xff]   ;;  %v453_v23 = vld [vmem:[%s2007_s11] sm:$0xff]  ;;  %v446_v54 = vstv %s442_s23  ;;  %vm2063_vm8 = vmpackc.low %vm1812_vm7, %vm505_vm3  ;;  %p1731_p10 = scmp.ne.s32.totalorder %s2131_s15, %s1730_s29 }
  0x65   : > { %1411 = vmatprep.subr.bf16.mxu0 %v1592_v7  ;;  %1473 = vmatprep.subr.bf16.mxu1 %v1810_v0  ;;  %v1606_v21 = vld [vmem:[#allocation7 + $0x88] sm:$0xff]   ;;  %v1608_v25 = vld [vmem:[#allocation7] sm:$0xff]   ;;  %v465_v27 = vmul.f32 %v453_v23, %v453_v23  ;;  %vm447_vm1 = vcmp.lt.s32.totalorder %v2039_v49, %v446_v54  ;;  %vm448_vm2 = vcmp.lt.s32.totalorder %v445_v53, %v446_v54  ;;  %vm2075_vm9 = vmpackc.low %vm525_vm6, %vm1812_vm7 }
  0x66   : > { %v454_v24 = vld [vmem:[%s2007_s11 + $0x8] sm:$0xff]  ;;  %v1609_v29 = vld [vmem:[#allocation7 + $0x80] sm:$0xff]   ;;  %v2053_v63 = vsel %vm447_vm1, 1.0, %v1810_v0  ;;  %v2056_v1 = vsel %vm448_vm2, 1.0, %v1810_v0  ;;  %s437_s11 = scalar_lea.vmem %s2179_s4, %s2032_s21  ;;  %p1732_p2 = pnand %p1731_p10, %p2210_p1 }
  0x67   : > { %v457_v26 = vadd.f32 %v454_v24, %v453_v23  ;;  %v466_v28 = vmul.f32 %v454_v24, %v454_v24  ;;  %v455_v50 = vld [vmem:[%s431_s26] sm:$0x1] }
  0x68   : > { %1412 = vmatpush3.bf16.msra.mxu0 %v1593_v8  ;;  %1474 = vmatpush3.bf16.msra.mxu1 %v1594_v9  ;;  %v456_v56 = vld [vmem:[%s434_s12] sm:$0x1]  ;;  %s1406_s12 = sshll.u32 %s1895_s0, 8  ;;  %p1733_p6 = pneg %p1732_p2 }
  0x69   : > { %1413 = vmatprep.subr.bf16.mxu0 %v1595_v10  ;;  %1475 = vmatprep.subr.bf16.mxu1 %v1810_v0  ;;  %v458_v30 = vrot.slane %v457_v26, 4  ;;  %v467_v31 = vadd.f32 %v466_v28, %v465_v27  ;;  %v1617_v27 = vld [vmem:[#allocation9 + $0x28] sm:$0xff]   ;;  %v1619_v28 = vld [vmem:[#allocation9 + $0x60] sm:$0xff]   ;;  %s2129_s30 = scalar_lea.hbm %s2185_s10, %s1406_s12  ;;  %s1813_s0 = smov [#allocation10]  }
  0x6b   : > { %v459_v32 = vadd.f32 %v458_v30, %v457_v26  ;;  %v468_v33 = vrot.slane %v467_v31, 4  ;;  %v1618_v26 = vld [vmem:[#allocation9 + $0xa8] sm:$0xff]   ;;  %v1620_v30 = vld [vmem:[#allocation9 + $0x20] sm:$0xff]  }
  0x6c   : > { %1414 = vmatpush3.bf16.msra.mxu0 %v1596_v11  ;;  %1476 = vmatpush3.bf16.msra.mxu1 %v1597_v12 }
  0x6d   : > { %1415 = vmatprep.subr.bf16.mxu0 %v1598_v13  ;;  %1477 = vmatprep.subr.bf16.mxu1 %v1810_v0  ;;  %v460_v34 = vrot.slane %v459_v32, 2  ;;  %v469_v35 = vadd.f32 %v468_v33, %v467_v31  ;;  %v1622_v31 = vld [vmem:[#allocation9 + $0x58] sm:$0xff]  }
  0x6e   : > { %v1623_v33 = vld [vmem:[#allocation9 + $0x18] sm:$0xff]  }
  0x6f   : > { %v461_v36 = vadd.f32 %v460_v34, %v459_v32  ;;  %v470_v37 = vrot.slane %v469_v35, 2  ;;  %v1624_v32 = vld [vmem:[#allocation9 + $0x98] sm:$0xff]   ;;  %v1625_v34 = vld [vmem:[#allocation9 + $0x50] sm:$0xff]  }
  0x70   : > { %1416 = vmatpush3.bf16.msra.mxu0 %v1599_v14  ;;  %1478 = vmatpush3.bf16.msra.mxu1 %v1600_v15 }
  0x71   : > { %1417 = vmatprep.subr.bf16.mxu0 %v1601_v16  ;;  %1479 = vmatprep.subr.bf16.mxu1 %v1810_v0  ;;  %v462_v38 = vrot.slane %v461_v36, 1  ;;  %v471_v39 = vadd.f32 %v470_v37, %v469_v35  ;;  %v1627_v35 = vld [vmem:[#allocation9 + $0x90] sm:$0xff]   ;;  %v1628_v37 = vld [vmem:[#allocation9 + $0x48] sm:$0xff]  }
  0x73   : > { %v463_v40 = vadd.f32 %v462_v38, %v461_v36  ;;  %v472_v41 = vrot.slane %v471_v39, 1  ;;  %v1626_v36 = vld [vmem:[#allocation9 + $0x10] sm:$0xff]   ;;  %v1630_v38 = vld [vmem:[#allocation9 + $0x88] sm:$0xff]  }
  0x74   : > { %1418 = vmatpush3.bf16.msra.mxu0 %v1602_v17  ;;  %1480 = vmatpush3.bf16.msra.mxu1 %v1603_v18 }
  0x75   : > { %1419 = vmatprep.subr.bf16.mxu0 %v1604_v19  ;;  %1481 = vmatprep.subr.bf16.mxu1 %v1810_v0  ;;  %v464_v42 = vmul.f32 0.0625, %v463_v40  ;;  %v473_v43 = vadd.f32 %v472_v41, %v471_v39  ;;  %v1610_v19 = vld [vmem:[#allocation9 + $0x78] sm:$0xff]   ;;  %v1629_v39 = vld [vmem:[#allocation9 + $0x8] sm:$0xff]   ;;  %v1631_v40 = vld [vmem:[#allocation9 + $0x40] sm:$0xff]  }
  0x76   : > { %v1632_v41 = vld [vmem:[#allocation9] sm:$0xff]  }
  0x77   : > { %v474_v44 = vmul.f32 0.0625, %v473_v43  ;;  %v475_v45 = vmul.f32 %v464_v42, %v464_v42 }
  0x78   : > { %1420 = vmatpush3.bf16.msra.mxu0 %v1605_v20  ;;  %1482 = vmatpush3.bf16.msra.mxu1 %v1606_v21  ;;  %v1611_v20 = vld [vmem:[#allocation9 + $0x38] sm:$0xff]  }
  0x79   : > { %1421 = vmatprep.subr.bf16.mxu0 %v1607_v22  ;;  %1483 = vmatprep.subr.bf16.mxu1 %v1810_v0  ;;  %v476_v46 = vsub.f32 %v474_v44, %v475_v45  ;;  %v1612_v21 = vld [vmem:[#allocation9 + $0xb8] sm:$0xff]   ;;  %v1613_v22 = vld [vmem:[#allocation9 + $0x70] sm:$0xff]   ;;  %v1338_v45 = vld [vmem:[%s2182_s7] ss:$0 sm:$0xff] }
  0x7b   : > { %v477_v47 = vadd.f32 1e-05, %v476_v46 }
  0x7c   : > { %1422 = vmatpush3.bf16.msra.mxu0 %v1608_v25  ;;  %1484 = vmatpush3.bf16.msra.mxu1 %v1609_v29  ;;  %v1616_v25 = vld [vmem:[#allocation9 + $0x68] sm:$0xff]   ;;  %v1621_v29 = vld [vmem:[#allocation9 + $0xa0] sm:$0xff]  }
  0x7d   : > { %1489 = vmatprep.subr.bf16.mxu1 %v1810_v0  ;;  %1634 = vrsqrt.f32 %v477_v47  ;;  %1438 = vmatprep.subr.bf16.mxu0 %v1610_v19 }
  0x8a   : > { %v1635_v52 = vpop.eup %1634 }
  0x8b   : > { %v479_v55 = vmul.f32 %v1635_v52, %v455_v50 }
  0x8d   : > { %v480_v57 = vmul.f32 %v479_v55, %v464_v42  ;;  %v486_v58 = vrot.slane %v479_v55, %v2046_v51  ;;  %v1633_v42 = vld [vmem:[#allocation9 + $0x80] sm:$0xff]  }
  0x8f   : > { %v481_v59 = vsub.f32 %v456_v56, %v480_v57  ;;  %v488_v60 = vmul.f32 %v486_v58, %v453_v23  ;;  %v489_v61 = vmul.f32 %v486_v58, %v454_v24  ;;  %v1615_v23 = vld [vmem:[#allocation9 + $0xb0] sm:$0xff]  }
  0x90   : > { %v1614_v24 = vld [vmem:[#allocation9 + $0x30] sm:$0xff]  }
  0x91   : > { %v494_v62 = vrot.slane %v481_v59, %v2046_v51 }
  0x93   : > { %v496_v2 = vadd.f32 %v494_v62, %v488_v60  ;;  %v497_v3 = vadd.f32 %v494_v62, %v489_v61 }
  0x95   : > { %v498_v4 = vmul.f32 %v2053_v63, %v496_v2  ;;  %v499_v5 = vmul.f32 %v2056_v1, %v497_v3 }
  0x97   : > { %v500_v6 = vrot.slane %v498_v4, 7  ;;  %v501_v7 = vrot.slane %v499_v5, 7  ;;  %v517_v8 = vrot.slane %v498_v4, 1  ;;  %v518_v9 = vrot.slane %v499_v5, 1 }
  0x98   : > { %v535_v10 = vpack.c.bf16 %v499_v5, %v498_v4 }
  0x99   : > { %v503_v12 = vsel %vm502_vm4, %v500_v6, %v501_v7  ;;  %v504_v13 = vsel %vm502_vm4, %v501_v7, %v500_v6  ;;  %v520_v14 = vsel %vm519_vm5, %v517_v8, %v518_v9  ;;  %v521_v15 = vsel %vm519_vm5, %v518_v9, %v517_v8 }
  0x9a   : > { %768 = vmatprep.mubr.bf16.mxu0 %v535_v10  ;;  %v1364_v17 = vpack.c.bf16 %v503_v12, %v504_v13  ;;  %v1367_v18 = vpack.c.bf16 %v521_v15, %v520_v14 }
  0x9c   : > { %1365 = vmatmul.mubr.msk.bf16.vlgmr.msra.gmra.mxu0 %vm2063_vm8, %v1364_v17  ;;  %1486 = vmatmul.mubr.msk.bf16.vlgmr.msra.gmra.mxu1 %vm2075_vm9, %v1367_v18 }
  0x9d   : > { %1505 = vmatprep.mubr.msk.bf16.mxu1 %vm1811_vm0, %v1810_v0  ;;  %1490 = vmatpush3.bf16.msra.mxu1 %v1612_v21 }
  0x9e   : > { %1439 = vmatpush3.bf16.msra.mxu0 %v1611_v20  ;;  %1491 = vmatprep.subr.bf16.mxu1 %v1810_v0 }
  0x9f   : > { %1440 = vmatprep.subr.bf16.mxu0 %v1613_v22 }
  0xa1   : > { %1492 = vmatpush3.bf16.msra.mxu1 %v1615_v23 }
  0xa2   : > { %1441 = vmatpush3.bf16.msra.mxu0 %v1614_v24  ;;  %1493 = vmatprep.subr.bf16.mxu1 %v1810_v0 }
  0xa3   : > { %1442 = vmatprep.subr.bf16.mxu0 %v1616_v25 }
  0xa5   : > { %1494 = vmatpush3.bf16.msra.mxu1 %v1618_v26 }
  0xa6   : > { %1443 = vmatpush3.bf16.msra.mxu0 %v1617_v27  ;;  %1495 = vmatprep.subr.bf16.mxu1 %v1810_v0 }
  0xa7   : > { %1444 = vmatprep.subr.bf16.mxu0 %v1619_v28 }
  0xa9   : > { %1496 = vmatpush3.bf16.msra.mxu1 %v1621_v29 }
  0xaa   : > { %1445 = vmatpush3.bf16.msra.mxu0 %v1620_v30  ;;  %1497 = vmatprep.subr.bf16.mxu1 %v1810_v0 }
  0xab   : > { %1446 = vmatprep.subr.bf16.mxu0 %v1622_v31 }
  0xad   : > { %1498 = vmatpush3.bf16.msra.mxu1 %v1624_v32 }
  0xae   : > { %1447 = vmatpush3.bf16.msra.mxu0 %v1623_v33  ;;  %1499 = vmatprep.subr.bf16.mxu1 %v1810_v0 }
  0xaf   : > { %1448 = vmatprep.subr.bf16.mxu0 %v1625_v34 }
  0xb1   : > { %1500 = vmatpush3.bf16.msra.mxu1 %v1627_v35 }
  0xb2   : > { %1449 = vmatpush3.bf16.msra.mxu0 %v1626_v36  ;;  %1501 = vmatprep.subr.bf16.mxu1 %v1810_v0 }
  0xb3   : > { %1450 = vmatprep.subr.bf16.mxu0 %v1628_v37 }
  0xb5   : > { %1502 = vmatpush3.bf16.msra.mxu1 %v1630_v38 }
  0xb6   : > { %1451 = vmatpush3.bf16.msra.mxu0 %v1629_v39  ;;  %1503 = vmatprep.subr.bf16.mxu1 %v1810_v0  ;;  %v836_v39 = vld [vmem:[%s437_s11] sm:$0x1]  ;;  %s1734_s11 = sshll.u32 %s1813_s0, 4  ;;  %s1735_s11 = int_to_ptr.vmem [resolvable:$false] %s1734_s11 }
  0xb7   : > { %1452 = vmatprep.subr.bf16.mxu0 %v1631_v40  ;;  %s1736_s23 = scalar_lea.vmem %s1735_s11, 512  ;;  %p1737_p12 = scmp.lt.s32.totalorder %s2131_s15, %s1735_s11 }
  0xb8   : > { %p1738_p7 = scmp.lt.s32.totalorder %s1736_s23, %s1730_s29 }
  0xb9   : > { %1504 = vmatpush3.bf16.msra.mxu1 %v1633_v42  ;;  %v837_v42 = vld [vmem:[%s440_s20] sm:$0x1] }
  0xba   : > { %1453 = vmatpush3.bf16.msra.mxu0 %v1632_v41  ;;  %p1739_p9 = por %p1738_p7, %p1737_p12 }
  0xbc   : > { %p1740_p13 = pnand %p1739_p9, %p1733_p6 }
 0x15c   : > { %v1423_v43 = vpop.f32.mrf.mxu0  ;;  %v811_v44 = vpop.f32.mrf.mxu1 }
 0x15e   : > { %v1424_v46 = vpop.f32.mrf.mxu0  ;;  %v1487_v47 = vpop.f32.mrf.mxu1 }
 0x15f   : > { %v1425_v48 = vadd.f32 %v1424_v46, %v1423_v43 }
 0x160   : > { %v1426_v50 = vpop.f32.mrf.mxu0  ;;  %v814_v52 = vpop.f32.mrf.mxu1 }
 0x161   : > { %v771_v53 = vadd.f32 %v1425_v48, %v1338_v45 }
 0x162   : > { %v1427_v54 = vpop.f32.mrf.mxu0  ;;  %v1488_v55 = vpop.f32.mrf.mxu1 }
 0x163   : > { %v812_v0 = vadd.f32 %v811_v44, %v771_v53  ;;  %v1428_v56 = vadd.f32 %v1427_v54, %v1426_v50 }
 0x165   : > { %v820_v57 = vmul.f32 0.044715, %v812_v0  ;;  %v774_v58 = vadd.f32 %v1428_v56, %v1338_v45  ;;  %v818_v10 = vmul.f32 0.5, %v812_v0 }
 0x167   : > { %v822_v59 = vmul.f32 %v820_v57, %v812_v0  ;;  %v815_v60 = vadd.f32 %v814_v52, %v774_v58 }
 0x169   : > { %v824_v61 = vmul.f32 %v822_v59, %v812_v0  ;;  %v821_v62 = vmul.f32 0.044715, %v815_v60  ;;  %v819_v13 = vmul.f32 0.5, %v815_v60 }
 0x16b   : > { %v826_v2 = vadd.f32 %v824_v61, %v812_v0  ;;  %v823_v3 = vmul.f32 %v821_v62, %v815_v60 }
 0x16d   : > { %v828_v4 = vmul.f32 0.7978846, %v826_v2  ;;  %v825_v5 = vmul.f32 %v823_v3, %v815_v60 }
 0x16f   : > { %1636 = vtanh.f32 %v828_v4  ;;  %v827_v6 = vadd.f32 %v825_v5, %v815_v60  ;;  %v1369_v5 = vld [vmem:[%s2184_s9] ss:$0 sm:$0xff] }
 0x171   : > { %v829_v7 = vmul.f32 0.7978846, %v827_v6 }
 0x173   : > { %1638 = vtanh.f32 %v829_v7 }
 0x17c   : > { %v1637_v8 = vpop.eup %1636 }
 0x17d   : > { %v832_v9 = vadd.f32 1.0, %v1637_v8 }
 0x17f   : > { %v834_v15 = vmul.f32 %v832_v9, %v818_v10 }
 0x180   : > { %v1639_v12 = vpop.eup %1638 }
 0x181   : > { %v833_v14 = vadd.f32 1.0, %v1639_v12  ;;  %v846_v19 = vmul.f32 %v834_v15, %v834_v15 }
 0x183   : > { %v835_v17 = vmul.f32 %v833_v14, %v819_v13 }
 0x185   : > { %v838_v18 = vadd.f32 %v835_v17, %v834_v15  ;;  %v847_v20 = vmul.f32 %v835_v17, %v835_v17 }
 0x187   : > { %v839_v21 = vrot.slane %v838_v18, 4  ;;  %v848_v22 = vadd.f32 %v847_v20, %v846_v19 }
 0x189   : > { %v840_v23 = vadd.f32 %v839_v21, %v838_v18  ;;  %v849_v24 = vrot.slane %v848_v22, 4 }
 0x18b   : > { %v841_v25 = vrot.slane %v840_v23, 2  ;;  %v850_v26 = vadd.f32 %v849_v24, %v848_v22 }
 0x18d   : > { %v842_v27 = vadd.f32 %v841_v25, %v840_v23  ;;  %v851_v28 = vrot.slane %v850_v26, 2 }
 0x18f   : > { %v843_v29 = vrot.slane %v842_v27, 1  ;;  %v852_v30 = vadd.f32 %v851_v28, %v850_v26 }
 0x191   : > { %v844_v31 = vadd.f32 %v843_v29, %v842_v27  ;;  %v853_v32 = vrot.slane %v852_v30, 1 }
 0x193   : > { %v845_v33 = vmul.f32 0.0625, %v844_v31  ;;  %v854_v34 = vadd.f32 %v853_v32, %v852_v30 }
 0x195   : > { %v855_v35 = vmul.f32 0.0625, %v854_v34  ;;  %v856_v36 = vmul.f32 %v845_v33, %v845_v33 }
 0x197   : > { %v857_v37 = vsub.f32 %v855_v35, %v856_v36 }
 0x199   : > { %v858_v38 = vadd.f32 1e-05, %v857_v37 }
 0x19b   : > { %1640 = vrsqrt.f32 %v858_v38 }
 0x1a8   : > { %v1641_v40 = vpop.eup %1640 }
 0x1a9   : > { %v860_v41 = vmul.f32 %v1641_v40, %v836_v39 }
 0x1ab   : > { %v861_v43 = vmul.f32 %v860_v41, %v845_v33  ;;  %v867_v44 = vrot.slane %v860_v41, %v2046_v51 }
 0x1ad   : > { %v862_v45 = vsub.f32 %v837_v42, %v861_v43  ;;  %v869_v46 = vmul.f32 %v867_v44, %v834_v15  ;;  %v870_v47 = vmul.f32 %v867_v44, %v835_v17 }
 0x1af   : > { %v875_v48 = vrot.slane %v862_v45, %v2046_v51 }
 0x1b1   : > { %v877_v50 = vadd.f32 %v875_v48, %v869_v46  ;;  %v878_v52 = vadd.f32 %v875_v48, %v870_v47 }
 0x1b3   : > { %v879_v53 = vmul.f32 %v2053_v63, %v877_v50  ;;  %v880_v54 = vmul.f32 %v2056_v1, %v878_v52 }
 0x1b5   : > { %v881_v55 = vrot.slane %v879_v53, 7  ;;  %v882_v0 = vrot.slane %v880_v54, 7  ;;  %v887_v56 = vrot.slane %v879_v53, 1  ;;  %v888_v57 = vrot.slane %v880_v54, 1 }
 0x1b6   : > { %v894_v58 = vpack.c.bf16 %v880_v54, %v879_v53 }
 0x1b7   : > { %v883_v59 = vsel %vm502_vm4, %v881_v55, %v882_v0  ;;  %v884_v60 = vsel %vm502_vm4, %v882_v0, %v881_v55  ;;  %v889_v51 = vsel %vm519_vm5, %v887_v56, %v888_v57  ;;  %v890_v61 = vsel %vm519_vm5, %v888_v57, %v887_v56 }
 0x1b8   : > { %1127 = vmatprep.mubr.bf16.mxu0 %v894_v58  ;;  %v1395_v62 = vpack.c.bf16 %v883_v59, %v884_v60  ;;  %v1398_v2 = vpack.c.bf16 %v890_v61, %v889_v51 }
 0x1ba   : > { %1396 = vmatmul.mubr.msk.bf16.vlgmr.msra.gmra.mxu0 %vm2063_vm8, %v1395_v62  ;;  %1506 = vmatmul.mubr.msk.bf16.vlgmr.msra.gmra.mxu1 %vm2075_vm9, %v1398_v2 }
 0x27a   : > { %v1454_v3 = vpop.f32.mrf.mxu0  ;;  %v1170_v4 = vpop.f32.mrf.mxu1 }
 0x27c   : > { %v1455_v6 = vpop.f32.mrf.mxu0  ;;  %v1507_v49 = vpop.f32.mrf.mxu1 }
 0x27d   : > { %v1456_v7 = vadd.f32 %v1455_v6, %v1454_v3 }
 0x27e   : > { %v1457_v8 = vpop.f32.mrf.mxu0  ;;  %v1173_v9 = vpop.f32.mrf.mxu1 }
 0x27f   : > { %v1130_v10 = vadd.f32 %v1456_v7, %v1369_v5 }
 0x280   : > { %v1458_v11 = vpop.f32.mrf.mxu0  ;;  %v1508_v12 = vpop.f32.mrf.mxu1 }
 0x281   : > { %v1171_v13 = vadd.f32 %v1170_v4, %v1130_v10  ;;  %v1459_v16 = vadd.f32 %v1458_v11, %v1457_v8 }
 0x283   : > { %v1177_v14 = vmul.f32 %v2053_v63, %v1171_v13  ;;  %v1133_v15 = vadd.f32 %v1459_v16, %v1369_v5 }
 0x285   : > { %1179 = vst [vmem:[%s428_s25] sm:$0xff] %v1177_v14  ;;  %v1174_v17 = vadd.f32 %v1173_v9, %v1133_v15 }
 0x287   : > { %v1178_v18 = vmul.f32 %v2056_v1, %v1174_v17 }
 0x289   : > { %1180 = vst [vmem:[%s428_s25 + $0x8] sm:$0xff] %v1178_v18 }
 0x28a   : > { %1743 = shalt.err (!%p1740_p13)
}
 0x28b   : > { %s1744_s14 = scalar_lea.hbm %s2129_s30, 256  ;;  %s1748_s26 = scalar_lea.hbm %s2185_s10, 512 }
 0x28c   : > { %p1745_p5 = scmp.ne.s32.totalorder %s2129_s30, %s1744_s14  ;;  %p1749_p8 = scmp.lt.s32.totalorder %s2129_s30, %s2185_s10 }
 0x28d   : > { %p1750_p3 = scmp.lt.s32.totalorder %s1748_s26, %s1744_s14 }
 0x28e   : > { %p1746_p0 = pnand %p1745_p5, %p2210_p1 }
 0x28f   : > { %p1751_p11 = por %p1750_p3, %p1749_p8 }
 0x290   : > { %p1747_p4 = pneg %p1746_p0 }
 0x292   : > { %p1752_p10 = pnand %p1751_p11, %p1747_p4 }
 0x294   : > { %1755 = shalt.err (!%p1752_p10)
}
 0x295   : > { %s1814_s28 = smov 128   ;;  %s1815_s6 = smov 8  }
 0x296   : > { %1519 = dma.vmem_to_hbm [thread:$0]  (%p2210_p1), %s2131_s15, 256, %s2129_s30, %s1182_s13, %s1814_s28, %s1814_s28, %s1815_s6  }
 0x297 PF: > { %s1210_s29 = sand.u32 1, %s1788_s16   ;;  %p2211_p2 = scmp.ne.s32.totalorder %s2193_s22, 0 }
 0x298   : > { %p2212_p6 = scmp.ge.s32.totalorder %s1800_s19, 2  ;;  %s1211_s0 = scalar_lea.sflag [#allocation6], %s1210_s29 }
 0x29a   : > { %p1533_p12 = pnand %p2212_p6, %p2211_p2 }
 0x29c   : > { %p1534_p7 = pneg %p1533_p12 }
 0x29e   : > { %1783 = dma.done.wait (%p1534_p7), %s1211_s0, 256  }
 0x29f   : > { %1785 = vsyncadd (%p1534_p7), %s1211_s0, 4294967040  ;;  %s2213_s11 = sld [smem:[#allocation15_spill]]  ;;  %p28_p9 = scmp.ge.s32.totalorder %s1946_s24, 4  }
 0x2a0   : > { %s2214_s16 = smov %s1792_s17  ;;  %s2215_s17 = smov %s1796_s18 }
 0x2a1   : > { %s2217_s19 = smov %s1946_s24  ;;  %30 = sbr.rel (!%p28_p9) target bundleno = 13 (0xd), region = 121 }
 0x2a5   : > { %s2216_s18 = smov %s2213_s11 }
 0x2a6   :  { %1216 = vsyncpa [#allocation5], 1 }
 0x2a7   :  { %1218 = vsyncpa [#allocation5 + $0x1], 1 }
 0x2a8   :  { %1219 = vsyncpa [#allocation8], 1 }
 0x2a9   :  { %1220 = vsyncpa [#allocation6], 1 }
 0x2aa   :  { %1222 = vsyncpa [#allocation6 + $0x1], 1 }

</bundles_post_ra>
